<compile_context>
chip_gen: v5e
topology: v5e:2x2
jax: 0.10.0
libtpu: 0.0.40
codegen_flags: <defaults>
</compile_context>

<pallas_src>
import functools
import math

import jax
import jax.numpy as jnp
from jax.experimental import pallas as pl
from jax.experimental.pallas import tpu as pltpu

_LANE = 128


def _round_up(x, m):
    return ((x + m - 1) // m) * m


def _sublane_multiple(dtype):
    # sublane packing per vreg: f32 -> 8, bf16 -> 16, int8/fp8 -> 32
    return max(8, 32 // max(jnp.dtype(dtype).itemsize, 1))


@functools.lru_cache(maxsize=None)
def _vmem_budget_bytes():
    """~80% of per-core VMEM (leaves headroom for Mosaic scratch/semaphores)."""
    cap = 64 * 1024 * 1024
    try:
        info = pltpu.get_tpu_info()
        cap = int(getattr(info, "vmem_capacity_bytes", cap))
    except Exception:
        pass
    return max(int(cap * 0.8), 32 * 1024 * 1024)


@functools.lru_cache(maxsize=None)
def _tile_maxes():
    # 128-MiB-VMEM parts (v5e/v6e) need >=1024 M/N tiles to reach the MXU
    # roofline; 64-MiB parts (v7x, 3.2 TB/s HBM) are compute-bound at 512.
    big_vmem = _vmem_budget_bytes() >= 80 * 1024 * 1024
    tmn = 1024 if big_vmem else 512
    return tmn, tmn, 1024  # (tm_max, tn_max, tk_max)


def _pick_tile(dim, max_tile, align):
    """(tile, padded_extent) for one dim; tile is always a multiple of `align`."""
    padded = _round_up(max(dim, 1), align)
    if padded <= max_tile:
        return padded, padded
    return max_tile, _round_up(dim, max_tile)


def _maybe_split_for_two_cores(tm, tn, Mp, Np, sublane):
    """If the whole output is a single tile, split it so both v7x TCs get work."""
    if Mp // tm > 1 or Np // tn > 1:
        return tm, tn
    half_n = tn // 2
    if half_n >= _LANE and half_n % _LANE == 0 and Np % half_n == 0:
        return tm, half_n
    half_m = tm // 2
    if half_m >= sublane and half_m % sublane == 0 and Mp % half_m == 0:
        return half_m, tn
    return tm, tn


def _linear_kernel_acc(x_ref, w_ref, o_ref, acc_ref):
    """One (tm, tn) output tile, accumulated over the K grid axis (axis 2)."""
    @pl.when(pl.program_id(2) == 0)
    def _():
        acc_ref[...] = jnp.zeros_like(acc_ref)

    acc_ref[...] += jnp.dot(
        x_ref[...], w_ref[...], preferred_element_type=jnp.float32
    )

    @pl.when(pl.program_id(2) == pl.num_programs(2) - 1)
    def _():
        o_ref[...] = acc_ref[...].astype(o_ref.dtype)


def _linear_kernel_single_k(x_ref, w_ref, o_ref):
    """Fast path when K fits in one block: single dot + store, no accumulator."""
    o_ref[...] = jnp.dot(
        x_ref[...], w_ref[...], preferred_element_type=jnp.float32
    ).astype(o_ref.dtype)


@functools.partial(
    jax.jit,
    static_argnames=("in_dim", "out_dim", "tn", "tk", "tm_override", "compute_dtype"),
)
def _linear_apply(x, w_padded, *, in_dim, out_dim, tn, tk, tm_override, compute_dtype):
    *batch_dims, k_in = x.shape
    if k_in != in_dim:
        raise ValueError(f"x last dim {k_in} != weight input_dim {in_dim}")
    out_dtype = x.dtype
    if compute_dtype is not None:
        x = x.astype(compute_dtype)  # activation-only cast; weight cast was done once

    M = math.prod(batch_dims) if batch_dims else 1
    x2d = x.reshape(M, in_dim)
    Kp, Np = w_padded.shape

    xb = x2d.dtype.itemsize
    wb = w_padded.dtype.itemsize
    ob = jnp.dtype(out_dtype).itemsize

    sub = _sublane_multiple(x2d.dtype)
    tm_max, _, _ = _tile_maxes()
    if tm_override is not None:
        if tm_override <= 0 or tm_override % sub != 0:
            raise ValueError(
                f"tm override must be a positive multiple of {sub} for dtype {x2d.dtype}")
        tm, Mp = tm_override, _round_up(M, tm_override)
    else:
        tm, Mp = _pick_tile(M, tm_max, sub)

    # Give both v7x TensorCores work when the output would be one tile.
    tm, tn = _maybe_split_for_two_cores(tm, tn, Mp, Np, sub)

    # Per-call padding touches only the activation (weight was pre-padded once).
    if Mp != M or Kp != in_dim:
        x2d = jnp.pad(x2d, ((0, Mp - M), (0, Kp - in_dim)))

    grid_m, grid_n, grid_k = Mp // tm, Np // tn, Kp // tk

    budget = _vmem_budget_bytes()
    acc_bytes = tm * tn * 4 if grid_k > 1 else 0
    tile_bytes = 2 * (tm * tk * xb + tk * tn * wb + tm * tn * ob) + acc_bytes
    if tile_bytes > budget:
        raise ValueError(
            f"Tile working set {tile_bytes / 2**20:.1f} MiB exceeds VMEM budget "
            f"{budget / 2**20:.1f} MiB; pass smaller tm/tn/tk.")
    vmem_limit = min(max(int(tile_bytes * 1.25), 32 * 1024 * 1024), budget)

    flops = 2 * M * in_dim * out_dim

    if grid_k == 1:
        # Keep the larger panel resident: Pallas skips the re-DMA when the
        # block index of an operand is unchanged along the innermost grid axis.
        x_resident = Mp * Kp * xb + grid_m * Kp * Np * wb
        w_resident = grid_n * Mp * Kp * xb + Kp * Np * wb
        if x_resident <= w_resident:
            grid = (grid_m, grid_n)
            x_map = lambda i, j: (i, 0)
            w_map = lambda i, j: (0, j)
            o_map = lambda i, j: (i, j)
            stream = x_resident
        else:
            grid = (grid_n, grid_m)
            x_map = lambda j, i: (i, 0)
            w_map = lambda j, i: (0, j)
            o_map = lambda j, i: (i, j)
            stream = w_resident

        cost = pl.CostEstimate(flops=flops, transcendentals=0,
                               bytes_accessed=stream + Mp * Np * ob)
        out2d = pl.pallas_call(
            _linear_kernel_single_k,
            out_shape=jax.ShapeDtypeStruct((Mp, Np), out_dtype),
            grid_spec=pltpu.PrefetchScalarGridSpec(
                num_scalar_prefetch=0,
                grid=grid,
                in_specs=[
                    pl.BlockSpec((tm, Kp), x_map),
                    pl.BlockSpec((Kp, tn), w_map),
                ],
                out_specs=pl.BlockSpec((tm, tn), o_map),
            ),
            compiler_params=pltpu.CompilerParams(
                dimension_semantics=("parallel", "parallel"),
                vmem_limit_bytes=vmem_limit,
            ),
            cost_estimate=cost,
        )(x2d, w_padded)
    else:
        cost = pl.CostEstimate(
            flops=flops, transcendentals=0,
            bytes_accessed=(grid_n * Mp * Kp * xb
                            + grid_m * Kp * Np * wb
                            + Mp * Np * ob))
        out2d = pl.pallas_call(
            _linear_kernel_acc,
            out_shape=jax.ShapeDtypeStruct((Mp, Np), out_dtype),
            grid_spec=pltpu.PrefetchScalarGridSpec(
                num_scalar_prefetch=0,
                grid=(grid_m, grid_n, grid_k),
                in_specs=[
                    pl.BlockSpec((tm, tk), lambda i, j, k: (i, k)),
                    pl.BlockSpec((tk, tn), lambda i, j, k: (k, j)),
                ],
                out_specs=pl.BlockSpec((tm, tn), lambda i, j, k: (i, j)),
                scratch_shapes=[pltpu.VMEM((tm, tn), jnp.float32)],
            ),
            compiler_params=pltpu.CompilerParams(
                dimension_semantics=("parallel", "parallel", "arbitrary"),
                vmem_limit_bytes=vmem_limit,
            ),
            cost_estimate=cost,
        )(x2d, w_padded)

    out2d = out2d[:M, :out_dim]
    return out2d.reshape(*batch_dims, out_dim)


class PallasLinear:
    """Pallas-TPU equivalent of the PyTorch Linear module: y = x @ weight.

    Weight padding (to lane/sublane-aligned tiles) and the optional
    compute-dtype cast happen once here, off the per-call hot path.
    """

    def __init__(self, weight, *, tm=None, tn=None, tk=None, compute_dtype=None):
        weight = jnp.asarray(weight)
        if weight.ndim != 2:
            raise ValueError("weight must be 2-D (input_dim, output_dim)")
        K, N = map(int, weight.shape)
        self.input_dim, self.output_dim = K, N
        self.compute_dtype = compute_dtype
        if compute_dtype is not None:
            weight = weight.astype(compute_dtype)  # once, not per forward

        _, tn_max, tk_max = _tile_maxes()

        if tn is not None:
            if tn <= 0 or tn % _LANE != 0:
                raise ValueError("tn override must be a positive multiple of 128")
            Np = _round_up(N, tn)
        else:
            tn, Np = _pick_tile(N, tn_max, _LANE)  # lane-dense output tiles

        if tk is not None:
            if tk <= 0 or (tk != K and tk % _LANE != 0):
                raise ValueError("tk override must equal input_dim or be a multiple of 128")
            Kp = _round_up(K, tk)
        elif K <= tk_max:
            tk, Kp = K, K  # single-K fast path, full-extent K block
        else:
            tk, Kp = tk_max, _round_up(K, tk_max)

        if (Kp, Np) != (K, N):
            weight = jnp.pad(weight, ((0, Kp - K), (0, Np - N)))  # once, off hot path
        self._w_padded = weight
        self._tn, self._tk = int(tn), int(tk)
        self._tm_override = tm

    def __call__(self, x):
        return _linear_apply(
            x, self._w_padded,
            in_dim=self.input_dim, out_dim=self.output_dim,
            tn=self._tn, tk=self._tk, tm_override=self._tm_override,
            compute_dtype=self.compute_dtype)


def linear_forward(x, weight, *, tm=None, tn=None, tk=None, compute_dtype=None):
    """One-shot convenience wrapper. For repeated forwards, build PallasLinear
    once so the weight padding/cast stays off the per-call hot path."""
    return PallasLinear(weight, tm=tm, tn=tn, tk=tk, compute_dtype=compute_dtype)(x)


if __name__ == "__main__":
    key = jax.random.PRNGKey(0)
    kx, kw, kx2, kw2 = jax.random.split(key, 4)

    # ---- Test 1: module-spec shapes (single-K fast path, lane-padded N).
    batch, seq, input_dim, output_dim = 2, 8, 32, 64
    weight = (
        jax.random.normal(kw, (input_dim, output_dim), dtype=jnp.float32)
        / jnp.sqrt(jnp.float32(input_dim))
    )
    x = jax.random.normal(kx, (batch, seq, input_dim), dtype=jnp.float32)

    layer = PallasLinear(weight)  # weight prep happens once here
    out = jax.block_until_ready(layer(x))
    ref = x @ weight
    assert out.shape == (batch, seq, output_dim)
    assert jnp.allclose(out, ref, atol=1e-5, rtol=1e-5), "mismatch vs reference (small)"

    # ---- Test 2: ragged shapes exercising padding + K-accumulation path.
    M2, K2, N2 = 50, 1200, 300
    w2 = (
        jax.random.normal(kw2, (K2, N2), dtype=jnp.float32)
        / jnp.sqrt(jnp.float32(K2))
    )
    x2 = jax.random.normal(kx2, (M2, K2), dtype=jnp.float32)

    out2 = jax.block_until_ready(linear_forward(x2, w2))
    ref2 = jnp.dot(x2, w2, precision=jax.lax.Precision.HIGHEST)
    assert out2.shape == (M2, N2)
    assert jnp.allclose(out2, ref2, atol=2e-3, rtol=2e-3), "mismatch vs reference (padded)"

    print("KERNEL_OK")
</pallas_src>

<mosaic_0001>
module attributes {stable_mosaic.version = 11 : i64} {
  func.func @_linear_kernel_single_k(%arg0: i32, %arg1: i32, %arg2: memref<8x32xf32, #tpu.memory_space<vmem>>, %arg3: memref<32x128xf32, #tpu.memory_space<vmem>>, %arg4: memref<8x128xf32, #tpu.memory_space<vmem>>) attributes {dimension_semantics = [#tpu.dimension_semantics<parallel>, #tpu.dimension_semantics<parallel>], iteration_bounds = array<i64: 1, 2>, scalar_prefetch = 0 : i64, scratch_operands = 0 : i64, tpu.core_type = #tpu.core_type<tc>, window_params = [{transform_indices = @transform_0, window_bounds = array<i64: 8, 32>}, {transform_indices = @transform_1, window_bounds = array<i64: 32, 128>}, {transform_indices = @transform_2, window_bounds = array<i64: 8, 128>}]} {
    %c0 = arith.constant 0 : index
    %c0_0 = arith.constant 0 : index
    %0 = vector.load %arg2[%c0, %c0_0] : memref<8x32xf32, #tpu.memory_space<vmem>>, vector<8x32xf32>
    %c0_1 = arith.constant 0 : index
    %c0_2 = arith.constant 0 : index
    %1 = vector.load %arg3[%c0_1, %c0_2] : memref<32x128xf32, #tpu.memory_space<vmem>>, vector<32x128xf32>
    %cst = arith.constant dense<0.000000e+00> : vector<8x128xf32>
    %2 = tpu.matmul %0, %1, %cst {dimension_numbers = #tpu.dot_dimension_numbers<[1], [0], [0], [1], [0, 0, 1, 1], [], []>} : vector<8x32xf32>, vector<32x128xf32>, vector<8x128xf32> -> vector<8x128xf32>
    %c0_3 = arith.constant 0 : index
    %c0_4 = arith.constant 0 : index
    %3 = vector.load %arg4[%c0_3, %c0_4] : memref<8x128xf32, #tpu.memory_space<vmem>>, vector<8x128xf32>
    tpu.vector_store %arg4[%c0_3, %c0_4], %2 {strides = array<i32>} : memref<8x128xf32, #tpu.memory_space<vmem>>, vector<8x128xf32>,
    return
  }
  func.func @transform_0(%arg0: i32, %arg1: i32) -> (i32, i32) {
    %c0_i32 = arith.constant 0 : i32
    %c0_i32_0 = arith.constant 0 : i32
    return %arg1, %c0_i32 : i32, i32
  }
  func.func @transform_1(%arg0: i32, %arg1: i32) -> (i32, i32) {
    %c0_i32 = arith.constant 0 : i32
    %c0_i32_0 = arith.constant 0 : i32
    return %c0_i32, %arg0 : i32, i32
  }
  func.func @transform_2(%arg0: i32, %arg1: i32) -> (i32, i32) {
    %c0_i32 = arith.constant 0 : i32
    return %arg1, %arg0 : i32, i32
  }
}

</mosaic_0001>

<bundles_post_ra>
// kernel: _linear_apply.1
= control target key start
LH: loop header
LB: loop body
LE: loop exit
PB: predicated region body
PF: predicated region fallthrough
CT: control target
= control target key end

     0   :  { %7 = vsyncpa [#allocation3], 0  ;;  %s660_s0 = inlined_call_operand.hbm [shape: f32[16,32], index: 0, kind: input, shape index: {}]   ;;  %s661_s1 = inlined_call_operand.hbm [shape: f32[32,128], index: 1, kind: input, shape index: {}]   ;;  %s662_s2 = inlined_call_operand.vmem [shape: f32[16,128], index: 2, kind: output, shape index: {}]  }
   0x1   :  { %9 = vsyncpa [#allocation3 + $0x1], 0 }
   0x2   :  { %10 = vsyncpa [#allocation5], 0  ;;  %s546_s9 = smov 0   ;;  %s548_s10 = smov 0  }
   0x3   :  { %s550_s11 = smov 0   ;;  %s552_s12 = smov 0  }
   0x4   :  { %s554_s13 = smov 0   ;;  %s556_s14 = smov 0  }
   0x5 LB: > { %s330_s15 = sadd.s32 4294967295, %s526_s14   ;;  %p332_p0 = scmp.ge.s32.totalorder %s526_s14, 1  ;;  %s526_s14 = sphi %s556_s14, %s16_s14   ;;  %s522_s13 = sphi %s554_s13, %s671_s13   ;;  %s518_s12 = sphi %s552_s12, %s670_s12   ;;  %s514_s11 = sphi %s550_s11, %s669_s11   ;;  %s510_s10 = sphi %s548_s10, %s668_s10   ;;  %s506_s9 = sphi %s546_s9, %s667_s9  }
   0x6   : > { %p578_p1 = scmp.eq.s32.totalorder %s330_s15, 0  ;;  %p113_p2 = scmp.lt.s32.totalorder %s526_s14, 3 }
   0x7   : > { %s126_s19 = sshll.u32 %s661_s1, 4  ;;  %s528_s21 = smov [#allocation4]   ;;  %s127_s19 = int_to_ptr.hbm [resolvable:$true] %s126_s19 }
   0x8   : > { %p586_p3 = pnand %p332_p0, %p113_p2  ;;  %s128_s22 = sshll.u32 %s528_s21, 4  ;;  %s129_s22 = int_to_ptr.vmem [resolvable:$true] %s128_s22 }
   0x9   : > { %s529_s23 = smov 128   ;;  %s530_s24 = smov 8  }
   0xa   : > { %p350_p4 = pneg %p586_p3  ;;  %s25_s25 = sadd.s32 1, %s522_s13 }
   0xb   : > { %p26_p6 = scmp.ge.s32.totalorder %s25_s25, 2  ;;  %p42_p7 = scmp.ne.s32.totalorder %s514_s11, %s510_s10 }
   0xc   : > { %p351_p5 = pnand %p350_p4, %p578_p1  ;;  %p43_p8 = scmp.eq.s32.totalorder %s526_s14, 0 }
   0xd   : > { %s673_s25 = smov (%p26_p6, %s25_s25), 0  ;;  %s35_s26 = sadd.s32 1, %s514_s11 }
   0xe   : > { %353 = dma.hbm_to_vmem [thread:$0]  (!%p351_p5), %s127_s19, 512, %s129_s22, [#allocation5], %s529_s23, %s529_s23, %s530_s24  }
   0xf   : > { %p48_p9 = scmp.ne.s32.totalorder %s510_s10, %s506_s9  ;;  %s32_s27 = ssub.s32 %s522_s13, %s673_s25 }
  0x10   : > { %p605_p10 = por %p43_p8, %p42_p7  ;;  %p33_p11 = scmp.eq.s32.totalorder %s32_s27, 0 }
  0x11   : > { %p611_p12 = por %p578_p1, %p48_p9  ;;  %s142_s30 = sand.u32 1, %s514_s11  }
  0x12   : > { %s336_s3 = sshll.u32 %s522_s13, 3  ;;  %p359_p13 = scmp.lt.s32.totalorder %s526_s14, 2 }
  0x13   : > { %s618_s4 = scalar_select %p33_p11, %s514_s11, %s35_s26  }
  0x14   : > { %s335_s5 = sshll.u32 %s142_s30, 3  ;;  %s150_s8 = scalar_lea.hbm %s660_s0, %s336_s3 }
  0x15   : > { %s152_s9 = sshll.u32 %s150_s8, 4  ;;  %s146_s15 = scalar_lea.vmem [#allocation2], %s335_s5  ;;  %s153_s9 = int_to_ptr.hbm [resolvable:$true] %s152_s9 }
  0x16   : > { %s154_s17 = sshll.u32 %s146_s15, 4  ;;  %p355_p0 = pnand %p359_p13, %p605_p10  ;;  %s155_s17 = int_to_ptr.vmem [resolvable:$true] %s154_s17 }
  0x17   : > { %s143_s18 = scalar_lea.sflag [#allocation3], %s142_s30  ;;  %163 = sbr.rel (%p586_p3) target bundleno = 166 (0xa6), region = 28 }
  0x18   : > { %357 = dma.hbm_to_vmem [thread:$0]  (!%p355_p0), %s153_s9, 128, %s155_s17, %s143_s18  }
  0x19   : > { %s165_s19 = sand.u32 (!%p586_p3), 1, %s510_s10  }
  0x1a   : > { %s338_s21 = sshll.u32 (!%p586_p3), %s165_s19, 3  ;;  %s166_s22 = scalar_lea.sflag (!%p586_p3), [#allocation3], %s165_s19 }
  0x1b   : > { %s169_s23 = scalar_lea.vmem (!%p586_p3), [#allocation2], %s338_s21 }
  0x1c   : > { %497 = dma.done.wait (%p611_p12), %s166_s22, 128  }
  0x1d   : > { %499 = vsyncadd (%p611_p12), %s166_s22, 4294967168 }
  0x1e   : > { %501 = dma.done.wait (%p578_p1), [#allocation5], 512  }
  0x1f   : > { %503 = vsyncadd (%p578_p1), [#allocation5], 4294966784  ;;  %v209_v0 = vld [vmem:[#allocation4 + $0x18] sm:$0xff]  ;;  %v208_v1 = vld [vmem:[#allocation4 + $0x10] sm:$0xff]  ;;  %vm210_vm0 = vcmask 261120   ;;  %p198_p2 = scmp.lt.s32.totalorder %s518_s12, 1 }
  0x20   : > { %226 = vmatpush.msra.mxu0 %v209_v0  ;;  %v207_v2 = vld [vmem:[#allocation4 + $0x8] sm:$0xff]  ;;  %v206_v3 = vld [vmem:[#allocation4] sm:$0xff]  ;;  %v205_v4 = vld [vmem:[%s169_s23] sm:$0xff] }
  0x21   : > { %s675_s12 = smov (!%p198_p2, %s518_s12), 1 }
  0x22   : > { %227 = vmatpush.msra.mxu0 %v208_v1  ;;  %s340_s20 = sshll.u32 %s675_s12, 3 }
  0x23   : > { %s204_s16 = scalar_lea.vmem %s662_s2, %s340_s20 }
  0x24   : > { %228 = vmatpush.msra.mxu0 %v207_v2 }
  0x26   : > { %229 = vmatpush.msra.mxu0 %v206_v3 }
  0x27   : > { %341 = vmatmul.msk.f32.vlgmr.msra.gmra.mxu0 %vm210_vm0, %v205_v4 }
  0xa4   : > { %v231_v5 = vpop.f32.mrf.mxu0 }
  0xa5   : > { %234 = vst [vmem:[%s204_s16] sm:$0xff] %v231_v5 }
  0xa6 PF: > { %s16_s14 = sadd.s32 1, %s526_s14   ;;  %s667_s9 = smov %s510_s10 }
  0xa7   : > { %p13_p1 = scmp.ge.s32.totalorder %s16_s14, 4   ;;  %s668_s10 = smov %s514_s11 }
  0xa8   : > { %s669_s11 = smov %s618_s4  ;;  %s670_s12 = smov %s522_s13 }
  0xa9   : > { %s671_s13 = smov %s673_s25  ;;  %15 = sbr.rel (!%p13_p1) target bundleno = 5 (0x5), region = 73 }
  0xae   :  { %260 = vsyncpa [#allocation3], 1 }
  0xaf   :  { %262 = vsyncpa [#allocation3 + $0x1], 1 }
  0xb0   :  { %263 = vsyncpa [#allocation5], 1 }

</bundles_post_ra>
